<compile_context>
chip_gen: v7x
topology: tpu7x:2x2x1
jax: 0.10.0
libtpu: 0.0.40
codegen_flags: <defaults>
</compile_context>

<pallas_src>
import functools

import jax
import jax.numpy as jnp
from jax import lax
from jax.experimental import pallas as pl
from jax.experimental.pallas import tpu as pltpu


def _round_up(a, b):
    return (a + b - 1) // b * b


def _prenorm_add_kernel(x_ref, w_ref, b_ref, gamma_ref, beta_ref, o_ref, *scratch,
                        eps, inv_d, n_col_tiles):
    # x_ref:      (tm, D)   input rows (full embed dim: needed for LN + residual)
    # w_ref:      (D, tn)   bf16 weight slice, pre-transposed to (in, out) layout
    # b_ref:      (1, tn)   f32 Linear bias slice
    # gamma/beta: (1, D)    f32 LayerNorm affine params
    # o_ref:      (tm, tn)  output tile
    # scratch[0]: (tm, D)   bf16 LN(x) cache, only allocated when n_col_tiles > 1
    j = pl.program_id(1)
    tn = o_ref.shape[1]

    def _ln_bf16(xf):
        # One-pass LN statistics in f32 (single sweep over the (tm, D) tile).
        s1 = jnp.sum(xf, axis=-1, keepdims=True)
        s2 = jnp.sum(xf * xf, axis=-1, keepdims=True)
        mean = s1 * inv_d
        var = s2 * inv_d - mean * mean
        inv = lax.rsqrt(var + eps)                       # EUP slot
        y = (xf - mean) * inv * gamma_ref[...] + beta_ref[...]
        return y.astype(jnp.bfloat16)                    # bf16 MXU operand

    if n_col_tiles == 1:
        # Single N tile: load + cast x once, reuse for LN input and residual.
        xf = x_ref[...].astype(jnp.float32)
        y = _ln_bf16(xf)
        x_res = xf
    else:
        # Compute LN once per row tile (j == 0), reuse across all N tiles.
        y_ref = scratch[0]

        @pl.when(j == 0)
        def _():
            y_ref[...] = _ln_bf16(x_ref[...].astype(jnp.float32))

        y = y_ref[...]
        start = pl.multiple_of(j * tn, 128)              # tn is a multiple of 128 here
        x_res = x_ref[:, pl.ds(start, tn)].astype(jnp.float32)

    # Canonical (M,K) x (K,N) matmul on the MXU (weight pre-transposed in wrapper).
    proj = lax.dot_general(
        y, w_ref[...],
        dimension_numbers=(((1,), (0,)), ((), ())),
        preferred_element_type=jnp.float32)

    # bias + residual add in f32, then cast to the output dtype.
    o_ref[...] = (x_res + proj + b_ref[...]).astype(o_ref.dtype)


def prenorm_and_add(x, w, b, gamma, beta, *, eps=1e-5):
    """Fused X + Linear(LayerNorm(X)).

    x: (B, S, D); w: (D, D) Linear weight in PyTorch (out, in) layout;
    b, gamma, beta: (D,).
    """
    B, S, D = x.shape
    rows = B * S

    # ---------------- generation-aware VMEM budget ----------------
    try:
        vmem_cap = int(pltpu.get_tpu_info().vmem_capacity_bytes)
    except Exception:
        vmem_cap = 64 << 20          # conservative: smallest per-core VMEM (v7x)
    vmem_budget = int(vmem_cap * 0.75)

    # ---------------- tile selection ----------------
    # Row-tile alignment: 256 when rows are large (v6e/v7x 256-wide MXU),
    # otherwise the sublane multiple for the input dtype.
    if rows >= 256:
        align = 256
    else:
        align = 16 if x.dtype == jnp.bfloat16 else 8
    tm_cap = _round_up(rows, align)

    xb = jnp.dtype(x.dtype).itemsize
    ob = jnp.dtype(x.dtype).itemsize

    def vmem_needed(tm_, tn_):
        need = (
            2 * tm_ * D * xb          # x tiles (double-buffered)
            + 2 * tm_ * tn_ * ob      # output tiles (double-buffered)
            + 2 * D * tn_ * 2         # bf16 weight blocks (double-buffered)
            + 2 * 3 * D * 4           # bias / gamma / beta blocks
        )
        if tn_ != D:
            need += tm_ * D * 2       # bf16 LN scratch (only when N-tiled)
        return need

    tm_cands = []
    for c in (1024, 512, 256, align):
        t = min(c, tm_cap)
        if t >= align and t not in tm_cands:
            tm_cands.append(t)
    tm_cands.sort(reverse=True)

    tn_sub_cands = []
    if D % 128 == 0:
        for c in (2048, 1024, 512, 256, 128):
            if c < D and D % c == 0:
                tn_sub_cands.append(c)

    chosen = None
    # Preferred: whole weight resident (tn = D) -> DMA'd once for the whole grid.
    for tm_ in tm_cands:
        if vmem_needed(tm_, D) <= vmem_budget:
            chosen = (tm_, D)
            break
    # Fallback (large D on small-VMEM chips): tile N, prioritizing a large tm
    # (weight HBM re-stream traffic scales as 1/tm), then the largest tn that fits.
    if chosen is None and tn_sub_cands:
        for tm_ in tm_cands:
            for tn_ in tn_sub_cands:
                if vmem_needed(tm_, tn_) <= vmem_budget:
                    chosen = (tm_, tn_)
                    break
            if chosen is not None:
                break
    if chosen is None:
        chosen = (tm_cands[-1], tn_sub_cands[-1] if tn_sub_cands else D)

    tm, tn = chosen
    n_col_tiles = D // tn
    rows_p = _round_up(rows, tm)

    # ---------------- operand prep (one-time XLA ops, outside the kernel) ----------------
    x2 = x.reshape(rows, D)
    if rows_p != rows:
        x2 = jnp.pad(x2, ((0, rows_p - rows), (0, 0)))
    # Pre-transpose to (D_in, D_out) and pre-cast to bf16: one-time D^2 work by XLA,
    # keeps the kernel's MXU push cadence clean and the weight lane-dense in N.
    w_t = w.astype(jnp.bfloat16).T
    b2 = b.reshape(1, D).astype(jnp.float32)
    g2 = gamma.reshape(1, D).astype(jnp.float32)
    be2 = beta.reshape(1, D).astype(jnp.float32)

    # ---------------- explicit VMEM limit, capped by physical capacity ----------------
    need = vmem_needed(tm, tn)
    vmem_limit = max(need + (4 << 20), 32 << 20)
    vmem_limit = min(vmem_limit, vmem_budget)
    vmem_limit = max(vmem_limit, need)            # safety for the fallback config
    vmem_limit = int(min(vmem_limit, vmem_cap))

    kernel = functools.partial(
        _prenorm_add_kernel, eps=eps, inv_d=1.0 / D, n_col_tiles=n_col_tiles)

    scratch_shapes = []
    if n_col_tiles > 1:
        scratch_shapes = [pltpu.VMEM((tm, D), jnp.bfloat16)]

    out = pl.pallas_call(
        kernel,
        out_shape=jax.ShapeDtypeStruct((rows_p, D), x.dtype),
        grid_spec=pltpu.PrefetchScalarGridSpec(
            num_scalar_prefetch=0,
            grid=(rows_p // tm, n_col_tiles),
            in_specs=[
                pl.BlockSpec((tm, D), lambda i, j: (i, 0)),   # x rows (full D)
                pl.BlockSpec((D, tn), lambda i, j: (0, j)),   # weight (in, out) slice
                pl.BlockSpec((1, tn), lambda i, j: (0, j)),   # bias N-slice
                pl.BlockSpec((1, D), lambda i, j: (0, 0)),    # LayerNorm gamma
                pl.BlockSpec((1, D), lambda i, j: (0, 0)),    # LayerNorm beta
            ],
            out_specs=pl.BlockSpec((tm, tn), lambda i, j: (i, j)),
            scratch_shapes=scratch_shapes,
        ),
        compiler_params=pltpu.CompilerParams(
            dimension_semantics=("parallel", "arbitrary"),
            vmem_limit_bytes=vmem_limit,
        ),
    )(x2, w_t, b2, g2, be2)

    return out[:rows].reshape(B, S, D)


def _reference(x, w, b, gamma, beta, eps=1e-5, mxu_dtype=jnp.float32):
    xf = x.astype(jnp.float32)
    mean = jnp.mean(xf, axis=-1, keepdims=True)
    var = jnp.mean((xf - mean) ** 2, axis=-1, keepdims=True)
    xn = (xf - mean) * lax.rsqrt(var + eps)
    y = xn * gamma + beta
    proj = lax.dot_general(
        y.astype(mxu_dtype), w.astype(mxu_dtype),
        dimension_numbers=(((y.ndim - 1,), (1,)), ((), ())),
        preferred_element_type=jnp.float32) + b
    return (xf + proj).astype(x.dtype)


if __name__ == "__main__":
    B, S, D = 2, 8, 128  # batch=2, seq=8, embed_dim=128 (lane-dense)
    key = jax.random.PRNGKey(0)
    kx, kw, kb = jax.random.split(key, 3)

    x = jax.random.normal(kx, (B, S, D), dtype=jnp.float32)
    # Deterministic parameters matching nn.Linear / nn.LayerNorm shapes.
    w = jax.random.normal(kw, (D, D), dtype=jnp.float32) * (1.0 / jnp.sqrt(D))
    b = jax.random.normal(kb, (D,), dtype=jnp.float32) * 0.01
    gamma = jnp.ones((D,), dtype=jnp.float32)   # nn.LayerNorm default weight
    beta = jnp.zeros((D,), dtype=jnp.float32)   # nn.LayerNorm default bias

    out = jax.block_until_ready(prenorm_and_add(x, w, b, gamma, beta))
    assert out.shape == (B, S, D)

    # Tight check vs a reference using the same bf16 MXU operands (f32 accumulate).
    ref_bf16 = _reference(x, w, b, gamma, beta, mxu_dtype=jnp.bfloat16)
    assert jnp.allclose(out, ref_bf16, atol=1e-3, rtol=1e-3), "mismatch vs bf16-matmul reference"
    # Loose check vs the pure-f32 reference (bf16 MXU rounding only).
    ref_f32 = _reference(x, w, b, gamma, beta, mxu_dtype=jnp.float32)
    assert jnp.allclose(out, ref_f32, atol=5e-2, rtol=5e-2), "mismatch vs f32 reference"

    # Ragged row count (B*S not a multiple of the tile) exercises the padding path.
    x_rag = jax.random.normal(jax.random.PRNGKey(1), (1, 5, D), dtype=jnp.float32)
    out_rag = jax.block_until_ready(prenorm_and_add(x_rag, w, b, gamma, beta))
    ref_rag = _reference(x_rag, w, b, gamma, beta, mxu_dtype=jnp.bfloat16)
    assert out_rag.shape == (1, 5, D)
    assert jnp.allclose(out_rag, ref_rag, atol=1e-3, rtol=1e-3), "mismatch on ragged rows"

    print("KERNEL_OK")
</pallas_src>

<mosaic_0001>
module attributes {stable_mosaic.version = 11 : i64} {
  func.func @_prenorm_add_kernel(%arg0: i32, %arg1: i32, %arg2: memref<16x128xf32, #tpu.memory_space<vmem>>, %arg3: memref<128x128xbf16, #tpu.memory_space<vmem>>, %arg4: memref<1x128xf32, #tpu.memory_space<vmem>>, %arg5: memref<1x128xf32, #tpu.memory_space<vmem>>, %arg6: memref<1x128xf32, #tpu.memory_space<vmem>>, %arg7: memref<16x128xf32, #tpu.memory_space<vmem>>) attributes {dimension_semantics = [#tpu.dimension_semantics<parallel>, #tpu.dimension_semantics<arbitrary>], iteration_bounds = array<i64: 1, 1>, scalar_prefetch = 0 : i64, scratch_operands = 0 : i64, tpu.core_type = #tpu.core_type<tc>, window_params = [{transform_indices = @transform_0, window_bounds = array<i64: 16, 128>}, {transform_indices = @transform_1, window_bounds = array<i64: 128, 128>}, {transform_indices = @transform_2, window_bounds = array<i64: 1, 128>}, {pipeline_mode = #tpu.pipeline_mode<synchronous>, transform_indices = @transform_3, window_bounds = array<i64: 1, 128>}, {pipeline_mode = #tpu.pipeline_mode<synchronous>, transform_indices = @transform_4, window_bounds = array<i64: 1, 128>}, {transform_indices = @transform_5, window_bounds = array<i64: 16, 128>}]} {
    %c0 = arith.constant 0 : index
    %c0_0 = arith.constant 0 : index
    %0 = vector.load %arg2[%c0, %c0_0] : memref<16x128xf32, #tpu.memory_space<vmem>>, vector<16x128xf32>
    %cst = arith.constant dense<0.000000e+00> : vector<16xf32>
    %1 = vector.multi_reduction <add>, %0, %cst [1] : vector<16x128xf32> to vector<16xf32>
    %2 = vector.shape_cast %1 : vector<16xf32> to vector<16x1xf32>
    %3 = arith.mulf %0, %0 : vector<16x128xf32>
    %cst_1 = arith.constant dense<0.000000e+00> : vector<16xf32>
    %4 = vector.multi_reduction <add>, %3, %cst_1 [1] : vector<16x128xf32> to vector<16xf32>
    %5 = vector.shape_cast %4 : vector<16xf32> to vector<16x1xf32>
    %cst_2 = arith.constant 7.812500e-03 : f32
    %6 = vector.broadcast %cst_2 : f32 to vector<16x1xf32>
    %7 = arith.mulf %2, %6 : vector<16x1xf32>
    %cst_3 = arith.constant 7.812500e-03 : f32
    %8 = vector.broadcast %cst_3 : f32 to vector<16x1xf32>
    %9 = arith.mulf %5, %8 : vector<16x1xf32>
    %10 = arith.mulf %7, %7 : vector<16x1xf32>
    %11 = arith.subf %9, %10 : vector<16x1xf32>
    %cst_4 = arith.constant 9.99999974E-6 : f32
    %12 = vector.broadcast %cst_4 : f32 to vector<16x1xf32>
    %13 = arith.addf %11, %12 : vector<16x1xf32>
    %14 = math.rsqrt %13 : vector<16x1xf32>
    %15 = vector.broadcast %7 : vector<16x1xf32> to vector<16x128xf32>
    %16 = arith.subf %0, %15 : vector<16x128xf32>
    %17 = vector.broadcast %14 : vector<16x1xf32> to vector<16x128xf32>
    %18 = arith.mulf %16, %17 : vector<16x128xf32>
    %c0_5 = arith.constant 0 : index
    %c0_6 = arith.constant 0 : index
    %19 = vector.load %arg5[%c0_5, %c0_6] : memref<1x128xf32, #tpu.memory_space<vmem>>, vector<1x128xf32>
    %20 = vector.broadcast %19 : vector<1x128xf32> to vector<16x128xf32>
    %21 = arith.mulf %18, %20 : vector<16x128xf32>
    %c0_7 = arith.constant 0 : index
    %c0_8 = arith.constant 0 : index
    %22 = vector.load %arg6[%c0_7, %c0_8] : memref<1x128xf32, #tpu.memory_space<vmem>>, vector<1x128xf32>
    %23 = vector.broadcast %22 : vector<1x128xf32> to vector<16x128xf32>
    %24 = arith.addf %21, %23 : vector<16x128xf32>
    %25 = arith.truncf %24 : vector<16x128xf32> to vector<16x128xbf16>
    %c0_9 = arith.constant 0 : index
    %c0_10 = arith.constant 0 : index
    %26 = vector.load %arg3[%c0_9, %c0_10] : memref<128x128xbf16, #tpu.memory_space<vmem>>, vector<128x128xbf16>
    %cst_11 = arith.constant dense<0.000000e+00> : vector<16x128xf32>
    %27 = tpu.matmul %25, %26, %cst_11 {dimension_numbers = #tpu.dot_dimension_numbers<[1], [0], [0], [1], [0, 0, 1, 1], [], []>} : vector<16x128xbf16>, vector<128x128xbf16>, vector<16x128xf32> -> vector<16x128xf32>
    %28 = arith.addf %0, %27 : vector<16x128xf32>
    %c0_12 = arith.constant 0 : index
    %c0_13 = arith.constant 0 : index
    %29 = vector.load %arg4[%c0_12, %c0_13] : memref<1x128xf32, #tpu.memory_space<vmem>>, vector<1x128xf32>
    %30 = vector.broadcast %29 : vector<1x128xf32> to vector<16x128xf32>
    %31 = arith.addf %28, %30 : vector<16x128xf32>
    %c0_14 = arith.constant 0 : index
    %c0_15 = arith.constant 0 : index
    %32 = vector.load %arg7[%c0_14, %c0_15] : memref<16x128xf32, #tpu.memory_space<vmem>>, vector<16x128xf32>
    tpu.vector_store %arg7[%c0_14, %c0_15], %31 {strides = array<i32>} : memref<16x128xf32, #tpu.memory_space<vmem>>, vector<16x128xf32>,
    return
  }
  func.func @transform_0(%arg0: i32, %arg1: i32) -> (i32, i32) {
    %c0_i32 = arith.constant 0 : i32
    %c0_i32_0 = arith.constant 0 : i32
    return %arg0, %c0_i32 : i32, i32
  }
  func.func @transform_1(%arg0: i32, %arg1: i32) -> (i32, i32) {
    %c0_i32 = arith.constant 0 : i32
    %c0_i32_0 = arith.constant 0 : i32
    return %c0_i32, %arg1 : i32, i32
  }
  func.func @transform_2(%arg0: i32, %arg1: i32) -> (i32, i32) {
    %c0_i32 = arith.constant 0 : i32
    %c0_i32_0 = arith.constant 0 : i32
    return %c0_i32, %arg1 : i32, i32
  }
  func.func @transform_3(%arg0: i32, %arg1: i32) -> (i32, i32) {
    %c0_i32 = arith.constant 0 : i32
    %c0_i32_0 = arith.constant 0 : i32
    %c0_i32_1 = arith.constant 0 : i32
    return %c0_i32, %c0_i32_0 : i32, i32
  }
  func.func @transform_4(%arg0: i32, %arg1: i32) -> (i32, i32) {
    %c0_i32 = arith.constant 0 : i32
    %c0_i32_0 = arith.constant 0 : i32
    %c0_i32_1 = arith.constant 0 : i32
    return %c0_i32, %c0_i32_0 : i32, i32
  }
  func.func @transform_5(%arg0: i32, %arg1: i32) -> (i32, i32) {
    %c0_i32 = arith.constant 0 : i32
    return %arg0, %arg1 : i32, i32
  }
}

</mosaic_0001>

<bundles_post_ra>
// kernel: tpu_custom_call.1
= control target key start
LH: loop header
LB: loop body
LE: loop exit
PB: predicated region body
PF: predicated region fallthrough
CT: control target
= control target key end

     0   :  { %10 = vsyncpa [#allocation3], 0  ;;  %s470_s0 = inlined_call_operand.hbm [shape: f32[16,128], index: 0, kind: input, shape index: {}]   ;;  %s471_s1 = inlined_call_operand.hbm [shape: bf16[128,128], index: 1, kind: input, shape index: {}]   ;;  %s472_s2 = inlined_call_operand.vmem [shape: f32[1,128], index: 2, kind: input, shape index: {}]   ;;  %s473_s3 = inlined_call_operand.vmem [shape: f32[1,128], index: 3, kind: input, shape index: {}]   ;;  %s474_s4 = inlined_call_operand.vmem [shape: f32[1,128], index: 4, kind: input, shape index: {}]   ;;  %s475_s5 = inlined_call_operand.hbm [shape: f32[16,128], index: 5, kind: output, shape index: {}]  }
   0x1   :  { %11 = vsyncpa [#allocation6], 0 }
   0x2   :  { %12 = vsyncpa [#allocation4], 0  ;;  %s366_s18 = smov [#allocation2]   ;;  %s294_s22 = scalar_lea.hbm %s470_s0, 256 }
   0x3   :  { %s18_s19 = sshll.u32 %s366_s18, 4  ;;  %p295_p0 = scmp.ne.s32.totalorder %s470_s0, %s294_s22  ;;  %s19_s19 = int_to_ptr.vmem [resolvable:$true] %s18_s19 }
   0x4   :  { %p298_p1 = scmp.lt.u32.totalorder %s294_s22, %s470_s0 }
   0x6   :  { %p300_p2 = pnand %p298_p1, %p295_p0 }
   0x8   :  { %303 = shalt.err (!%p300_p2)
}
   0x9   :  { %s304_s27 = scalar_lea.vmem %s19_s19, 256  ;;  %p309_p4 = scmp.lt.s32.totalorder %s19_s19, %s19_s19 }
   0xa   :  { %p305_p3 = scmp.ne.s32.totalorder %s19_s19, %s304_s27  ;;  %p310_p5 = scmp.lt.s32.totalorder %s304_s27, %s304_s27 }
   0xc   :  { %p311_p6 = por %p310_p5, %p309_p4 }
   0xe   :  { %p312_p7 = pnand %p311_p6, %p305_p3 }
  0x10   :  { %315 = shalt.err (!%p312_p7)
}
  0x11   :  { %s367_s28 = smov 128   ;;  %s368_s29 = smov 8  }
  0x12   :  { %24 = dma.hbm_to_vmem [thread:$0]  %s470_s0, 256, %s19_s19, [#allocation3], %s367_s28, %s367_s28, %s368_s29  }
  0x13   :  { %s369_s7 = smov [#allocation5]   ;;  %s316_s11 = scalar_lea.hbm %s471_s1, 1024 }
  0x14   :  { %s30_s8 = sshll.u32 %s369_s7, 4  ;;  %p317_p8 = scmp.ne.s32.totalorder %s471_s1, %s316_s11  ;;  %s31_s8 = int_to_ptr.vmem [resolvable:$true] %s30_s8 }
  0x15   :  { %p320_p9 = scmp.lt.u32.totalorder %s316_s11, %s471_s1 }
  0x17   :  { %p322_p10 = pnand %p320_p9, %p317_p8 }
  0x19   :  { %325 = shalt.err (!%p322_p10)
}
  0x1a   :  { %s326_s16 = scalar_lea.vmem %s31_s8, 1024  ;;  %p331_p12 = scmp.lt.s32.totalorder %s31_s8, %s31_s8 }
  0x1b   :  { %p327_p11 = scmp.ne.s32.totalorder %s31_s8, %s326_s16  ;;  %p332_p13 = scmp.lt.s32.totalorder %s326_s16, %s326_s16 }
  0x1d   :  { %p333_p0 = por %p332_p13, %p331_p12 }
  0x1f   :  { %p334_p1 = pnand %p333_p0, %p327_p11 }
  0x21   :  { %337 = shalt.err (!%p334_p1)
}
  0x22   :  { %s370_s0 = smov 64   ;;  %s371_s17 = smov 4  }
  0x23   :  { %36 = dma.hbm_to_vmem [thread:$0]  %s471_s1, 1024, %s31_s8, [#allocation6], %s370_s0, %s370_s0, %s371_s17  }
  0x24   :  { %360 = dma.done.wait [#allocation3], 256  }
  0x25   :  { %361 = vsyncadd [#allocation3], 4294967040 }
  0x26   :  { %362 = dma.done.wait [#allocation6], 1024  }
  0x27   :  { %363 = vsyncadd [#allocation6], 4294966272  ;;  %v372_v0 = vmov 0.0   ;;  %v432_v1 = vld [vmem:[#allocation2] sm:$0xff]  ;;  %v434_v2 = vld [vmem:[#allocation2 + $0x8] sm:$0xff]  ;;  %vm373_vm0 = vmmov 0  }
  0x28   :  { %253 = vmatprep.subr.bf16.mxu0 %v372_v0  ;;  %52 = vadd.xlane.f32.xlu0 %v432_v1  ;;  %v56_v3 = vmul.f32 %v432_v1, %v432_v1  ;;  %v57_v4 = vmul.f32 %v434_v2, %v434_v2  ;;  %v282_v5 = vld [vmem:[#allocation5] sm:$0xff]   ;;  %v283_v6 = vld [vmem:[#allocation5 + $0x8] sm:$0xff]   ;;  %v284_v7 = vld [vmem:[#allocation5 + $0x10] sm:$0xff]  }
  0x29   :  { %254 = vmatpush3.bf16.msra.mxu0 %v282_v5  ;;  %v285_v8 = vld [vmem:[#allocation5 + $0x18] sm:$0xff]   ;;  %v286_v9 = vld [vmem:[#allocation5 + $0x20] sm:$0xff]   ;;  %269 = vmatprep.mubr.msk.bf16.mxu0 %vm373_vm0, %v372_v0  ;;  %v287_v10 = vld [vmem:[#allocation5 + $0x28] sm:$0xff]  }
  0x2a   :  { %58 = vadd.xlane.f32.xlu1 %v56_v3  ;;  %255 = vmatprep.subr.bf16.mxu0 %v372_v0  ;;  %v288_v11 = vld [vmem:[#allocation5 + $0x30] sm:$0xff]   ;;  %v289_v12 = vld [vmem:[#allocation5 + $0x38] sm:$0xff]  }
  0x2b   :  { %v233_v30 = vld [vmem:[%s473_s3] ss:$0 sm:$0xff]  ;;  %s374_s3 = smov [#allocation7]  }
  0x2c   :  { %54 = vadd.xlane.f32.xlu0 %v434_v2  ;;  %v234_v35 = vld [vmem:[%s474_s4] ss:$0 sm:$0xff]  ;;  %s220_s25 = sshll.u32 %s374_s3, 4  ;;  %s221_s25 = int_to_ptr.vmem [resolvable:$true] %s220_s25 }
  0x2d   :  { %256 = vmatpush3.bf16.msra.mxu0 %v283_v6  ;;  %v243_v41 = vld [vmem:[%s472_s2] ss:$0 sm:$0xff]  ;;  %s338_s4 = scalar_lea.vmem %s221_s25, 256  ;;  %p343_p3 = scmp.lt.s32.totalorder %s221_s25, %s221_s25 }
  0x2e   :  { %60 = vadd.xlane.f32.xlu1 %v57_v4  ;;  %257 = vmatprep.subr.bf16.mxu0 %v372_v0  ;;  %p339_p2 = scmp.ne.s32.totalorder %s221_s25, %s338_s4  ;;  %p344_p4 = scmp.lt.s32.totalorder %s338_s4, %s338_s4 }
  0x30   :  { %p345_p5 = por %p344_p4, %p343_p3 }
  0x31   :  { %258 = vmatpush3.bf16.msra.mxu0 %v284_v7 }
  0x32   :  { %259 = vmatprep.subr.bf16.mxu0 %v372_v0  ;;  %p346_p6 = pnand %p345_p5, %p339_p2 }
  0x35   :  { %260 = vmatpush3.bf16.msra.mxu0 %v285_v8 }
  0x36   :  { %261 = vmatprep.subr.bf16.mxu0 %v372_v0 }
  0x39   :  { %262 = vmatpush3.bf16.msra.mxu0 %v286_v9 }
  0x3a   :  { %263 = vmatprep.subr.bf16.mxu0 %v372_v0 }
  0x3d   :  { %264 = vmatpush3.bf16.msra.mxu0 %v287_v10 }
  0x3e   :  { %265 = vmatprep.subr.bf16.mxu0 %v372_v0 }
  0x41   :  { %266 = vmatpush3.bf16.msra.mxu0 %v288_v11 }
  0x42   :  { %267 = vmatprep.subr.bf16.mxu0 %v372_v0 }
  0x45   :  { %268 = vmatpush3.bf16.msra.mxu0 %v289_v12 }
  0xb5   :  { %v53_v13 = vpop.xlane.xlu0 %52 }
  0xb6   :  { %v62_v14 = vmul.f32 0.0078125, %v53_v13 }
  0xb7   :  { %v59_v15 = vpop.xlane.xlu1 %58 }
  0xb8   :  { %v66_v16 = vmul.f32 %v62_v14, %v62_v14  ;;  %v64_v17 = vmul.f32 0.0078125, %v59_v15  ;;  %v74_v27 = vsub.f32 %v432_v1, %v62_v14 }
  0xb9   :  { %v55_v18 = vpop.xlane.xlu0 %54 }
  0xba   :  { %v68_v19 = vsub.f32 %v64_v17, %v66_v16  ;;  %v63_v20 = vmul.f32 0.0078125, %v55_v18 }
  0xbb   :  { %v61_v21 = vpop.xlane.xlu1 %60 }
  0xbc   :  { %v70_v22 = vadd.f32 1e-05, %v68_v19  ;;  %v67_v23 = vmul.f32 %v63_v20, %v63_v20  ;;  %v65_v24 = vmul.f32 0.0078125, %v61_v21  ;;  %v75_v31 = vsub.f32 %v434_v2, %v63_v20 }
  0xbe   :  { %290 = vrsqrt.f32 %v70_v22  ;;  %v69_v25 = vsub.f32 %v65_v24, %v67_v23 }
  0xc0   :  { %v71_v26 = vadd.f32 1e-05, %v69_v25 }
  0xc2   :  { %292 = vrsqrt.f32 %v71_v26 }
  0xc8   :  { %v291_v28 = vpop.eup %290 }
  0xc9   :  { %v76_v29 = vmul.f32 %v291_v28, %v74_v27 }
  0xcb   :  { %v85_v34 = vmul.f32 %v233_v30, %v76_v29 }
  0xcc   :  { %v293_v32 = vpop.eup %292 }
  0xcd   :  { %v77_v33 = vmul.f32 %v293_v32, %v75_v31  ;;  %v94_v37 = vadd.f32 %v234_v35, %v85_v34 }
  0xcf   :  { %v86_v36 = vmul.f32 %v233_v30, %v77_v33 }
  0xd1   :  { %v95_v38 = vadd.f32 %v234_v35, %v86_v36 }
  0xd3   :  { %v96_v39 = vpack.c.bf16 %v95_v38, %v94_v37 }
  0xd5   :  { %270 = vmatmul.mubr.bf16.vlgmr.msra.gmra.mrb[0].mxu0 %v96_v39 }
 0x1a8   :  { %v195_v40 = vpop.f32.mrb[0].mxu0 }
 0x1a9   :  { %v202_v42 = vadd.f32 %v195_v40, %v432_v1  ;;  %v271_v43 = vpop.f32.mrb[1].mxu0 }
 0x1aa   :  { %v198_v44 = vpop.f32.mrb[2].mxu0 }
 0x1ab   :  { %v211_v45 = vadd.f32 %v243_v41, %v202_v42  ;;  %v203_v46 = vadd.f32 %v198_v44, %v434_v2  ;;  %v272_v47 = vpop.f32.mrb[3].mxu0 }
 0x1ad   :  { %213 = vst [vmem:[#allocation7] sm:$0xff] %v211_v45  ;;  %v212_v48 = vadd.f32 %v243_v41, %v203_v46 }
 0x1af   :  { %214 = vst [vmem:[#allocation7 + $0x8] sm:$0xff] %v212_v48 }
 0x1b0   :  { %349 = shalt.err (!%p346_p6)
}
 0x1b1   :  { %s350_s27 = scalar_lea.hbm %s475_s5, 256 }
 0x1b2   :  { %p351_p7 = scmp.ne.s32.totalorder %s475_s5, %s350_s27  ;;  %p354_p8 = scmp.lt.u32.totalorder %s350_s27, %s475_s5 }
 0x1b4   :  { %p356_p9 = pnand %p354_p8, %p351_p7 }
 0x1b6   :  { %359 = shalt.err (!%p356_p9)
}
 0x1b7   :  { %226 = dma.vmem_to_hbm [thread:$0]  %s221_s25, 256, %s475_s5, [#allocation4], %s367_s28, %s367_s28, %s368_s29  }
 0x1b8   :  { %364 = dma.done.wait [#allocation4], 256  }
 0x1b9   :  { %365 = vsyncadd [#allocation4], 4294967040 }
 0x1ba   :  { %230 = vsyncpa [#allocation3], 1 }
 0x1bb   :  { %231 = vsyncpa [#allocation6], 1 }
 0x1bc   :  { %232 = vsyncpa [#allocation4], 1 }

</bundles_post_ra>
